<compile_context>
chip_gen: v7x
topology: tpu7x:2x2x1
jax: 0.10.0
libtpu: 0.0.40
codegen_flags: <defaults>
</compile_context>

<pallas_src>
import functools
import math

import jax
import jax.numpy as jnp
from jax import lax
from jax.experimental import pallas as pl
from jax.experimental.pallas import tpu as pltpu


# --------------------------- kernels ---------------------------------------

def _apply_act(h, act):
    if act == "relu":
        return jnp.maximum(h, 0.0)
    if act == "gelu":
        # Exact GELU (PyTorch nn.GELU() default): 0.5*x*(1+erf(x/sqrt(2)))
        return 0.5 * h * (1.0 + lax.erf(h * (1.0 / math.sqrt(2.0))))
    raise ValueError(act)


def _linear_kernel(x_ref, w_ref, b_ref, o_ref):
    # Native-dtype operands into the MXU, f32 accumulation.
    y = jnp.dot(x_ref[...], w_ref[...], preferred_element_type=jnp.float32)
    o_ref[...] = (y + b_ref[...].astype(jnp.float32)).astype(o_ref.dtype)


def _mlp2_fused_kernel(x_ref, w1_ref, b1_ref, w2_ref, b2_ref, o_ref, *, act):
    # Whole hidden dim in one tile: no accumulator scratch, single store.
    h = jnp.dot(x_ref[...], w1_ref[...], preferred_element_type=jnp.float32)
    h = _apply_act(h + b1_ref[...].astype(jnp.float32), act)
    y = jnp.dot(h.astype(w2_ref.dtype), w2_ref[...],
                preferred_element_type=jnp.float32)
    o_ref[...] = (y + b2_ref[...].astype(jnp.float32)).astype(o_ref.dtype)


def _mlp2_tiled_kernel(x_ref, w1_ref, b1_ref, w2_ref, b2_ref, o_ref, acc_ref,
                       *, act):
    # H is tiled by the last ("arbitrary") grid axis; f32 accumulator scratch.
    k = pl.program_id(1)

    @pl.when(k == 0)
    def _():
        acc_ref[...] = jnp.zeros_like(acc_ref)

    h = jnp.dot(x_ref[...], w1_ref[...], preferred_element_type=jnp.float32)
    h = _apply_act(h + b1_ref[...].astype(jnp.float32), act)
    acc_ref[...] += jnp.dot(h.astype(w2_ref.dtype), w2_ref[...],
                            preferred_element_type=jnp.float32)

    @pl.when(k == pl.num_programs(1) - 1)
    def _():
        o_ref[...] = (acc_ref[...]
                      + b2_ref[...].astype(jnp.float32)).astype(o_ref.dtype)


# --------------------------- helpers ----------------------------------------

def _round_up(n, m):
    return (n + m - 1) // m * m


def _pad_axis(a, target, axis):
    pad = target - a.shape[axis]
    if pad == 0:
        return a
    widths = [(0, 0)] * a.ndim
    widths[axis] = (0, pad)
    return jnp.pad(a, widths)


def _vmem_limit(nbytes):
    # Tiles + pipeline slack; clamp to 64 MiB so the value is legal on every
    # generation (v7x has 64 MiB per TC, v5e/v6e have 128 MiB).
    return int(min(64 * 1024 * 1024, max(2 * nbytes, 32 * 1024 * 1024)))


# --------------------------- wrapper ----------------------------------------

def mlp_block_forward(x, params, mlp_type, *, tm=256, tn=512, th=512):
    """x: [B, S, D] -> [B, S, D], matching MLPBlock.forward semantics.

    tm: row (token) tile, tn: output tile for 'linear', th: hidden tile for
    'relu'/'gelu'.  Defaults are 128/256-aligned; lower th on v7x if VMEM is
    tight (footprint scales with D*th).
    """
    B, S, D = x.shape
    M = B * S
    x2 = x.reshape(M, D)

    # Sublane packing of the I/O dtype: 8 rows (f32) / 16 rows (bf16).
    sub = 16 if x.dtype == jnp.bfloat16 else 8
    tm_eff = tm if M >= tm else _round_up(M, sub)
    M_pad = _round_up(M, tm_eff)
    Dp = _round_up(D, 128)                 # lane-dense feature dim
    # Zero pads: no garbage rows through erf, padded K columns contribute 0.
    x2p = _pad_axis(_pad_axis(x2, M_pad, 0), Dp, 1)
    gm = M_pad // tm_eff

    isz = jnp.dtype(x.dtype).itemsize

    if mlp_type == "linear":
        w, b = params["w"], params["b"]            # w: [D, D] (in, out), b: [1, D]
        wsz = jnp.dtype(w.dtype).itemsize
        tn_eff = tn if Dp >= tn else Dp
        N_pad = _round_up(Dp, tn_eff)
        wp = _pad_axis(_pad_axis(w, Dp, 0), N_pad, 1)
        bp = _pad_axis(b, N_pad, 1)
        gn = N_pad // tn_eff

        need = (2 * tm_eff * Dp * isz              # x tile (double buffered)
                + 2 * tm_eff * tn_eff * isz        # out tile
                + 2 * (Dp * tn_eff + tn_eff) * wsz)  # w/b tiles
        out2 = pl.pallas_call(
            _linear_kernel,
            out_shape=jax.ShapeDtypeStruct((M_pad, N_pad), x.dtype),
            grid_spec=pltpu.PrefetchScalarGridSpec(
                num_scalar_prefetch=0,
                grid=(gm, gn),
                in_specs=[
                    pl.BlockSpec((tm_eff, Dp), lambda i, j: (i, 0)),
                    pl.BlockSpec((Dp, tn_eff), lambda i, j: (0, j)),
                    pl.BlockSpec((1, tn_eff), lambda i, j: (0, j)),
                ],
                out_specs=pl.BlockSpec((tm_eff, tn_eff), lambda i, j: (i, j)),
            ),
            compiler_params=pltpu.CompilerParams(
                dimension_semantics=("parallel", "parallel"),
                vmem_limit_bytes=_vmem_limit(need)),
        )(x2p, wp, bp)
        out2 = out2[:M, :D]

    elif mlp_type in ("relu", "gelu"):
        w1, b1, w2, b2 = params["w1"], params["b1"], params["w2"], params["b2"]
        H = w1.shape[1]
        wsz = jnp.dtype(w1.dtype).itemsize
        Hp = _round_up(H, 128)                     # lane-dense hidden dim
        th_eff = th if Hp >= th else Hp
        H_pad = _round_up(Hp, th_eff)
        gh = H_pad // th_eff

        # Zero padding keeps results exact: act(0 + 0) @ 0 contributes nothing.
        w1p = _pad_axis(_pad_axis(w1, Dp, 0), H_pad, 1)
        b1p = _pad_axis(b1, H_pad, 1)
        w2p = _pad_axis(_pad_axis(w2, H_pad, 0), Dp, 1)
        b2p = _pad_axis(b2, Dp, 1)

        need = (2 * tm_eff * Dp * isz                          # x tile
                + 2 * tm_eff * Dp * isz                        # out tile
                + 2 * (Dp * th_eff + th_eff + th_eff * Dp) * wsz  # w1/b1/w2
                + 2 * Dp * wsz                                 # b2
                + tm_eff * th_eff * 4                          # f32 intermediate h
                + (0 if gh == 1 else tm_eff * Dp * 4))         # f32 accumulator

        if gh == 1:
            kernel = functools.partial(_mlp2_fused_kernel, act=mlp_type)
            grid_spec = pltpu.PrefetchScalarGridSpec(
                num_scalar_prefetch=0,
                grid=(gm,),
                in_specs=[
                    pl.BlockSpec((tm_eff, Dp), lambda i: (i, 0)),
                    pl.BlockSpec((Dp, th_eff), lambda i: (0, 0)),
                    pl.BlockSpec((1, th_eff), lambda i: (0, 0)),
                    pl.BlockSpec((th_eff, Dp), lambda i: (0, 0)),
                    pl.BlockSpec((1, Dp), lambda i: (0, 0)),
                ],
                out_specs=pl.BlockSpec((tm_eff, Dp), lambda i: (i, 0)),
            )
            dims = ("parallel",)
        else:
            kernel = functools.partial(_mlp2_tiled_kernel, act=mlp_type)
            grid_spec = pltpu.PrefetchScalarGridSpec(
                num_scalar_prefetch=0,
                grid=(gm, gh),                     # H (reduction) axis last
                in_specs=[
                    pl.BlockSpec((tm_eff, Dp), lambda i, k: (i, 0)),
                    pl.BlockSpec((Dp, th_eff), lambda i, k: (0, k)),
                    pl.BlockSpec((1, th_eff), lambda i, k: (0, k)),
                    pl.BlockSpec((th_eff, Dp), lambda i, k: (k, 0)),
                    pl.BlockSpec((1, Dp), lambda i, k: (0, 0)),
                ],
                out_specs=pl.BlockSpec((tm_eff, Dp), lambda i, k: (i, 0)),
                scratch_shapes=[pltpu.VMEM((tm_eff, Dp), jnp.float32)],
            )
            dims = ("parallel", "arbitrary")

        out2 = pl.pallas_call(
            kernel,
            out_shape=jax.ShapeDtypeStruct((M_pad, Dp), x.dtype),
            grid_spec=grid_spec,
            compiler_params=pltpu.CompilerParams(
                dimension_semantics=dims,
                vmem_limit_bytes=_vmem_limit(need)),
        )(x2p, w1p, b1p, w2p, b2p)
        out2 = out2[:M, :D]
    else:
        raise ValueError(f"mlp_type = {mlp_type!r} is not supported!")

    return out2.reshape(B, S, D)


# --------------------------- param init -------------------------------------

def _init_linear(key, in_dim, out_dim, dtype=jnp.float32):
    # Mimic nn.Linear default init: U(-1/sqrt(in), 1/sqrt(in)) for W and b.
    kw, kb = jax.random.split(key)
    bound = 1.0 / math.sqrt(in_dim)
    w = jax.random.uniform(kw, (out_dim, in_dim), dtype, -bound, bound)  # torch layout [out, in]
    b = jax.random.uniform(kb, (out_dim,), dtype, -bound, bound)
    # transpose to [in, out] for the kernel; bias as [1, out]
    return w.T, b.reshape(1, out_dim)


def init_mlp_block(key, llm_dim, mlp_dim, mlp_type, dtype=jnp.float32):
    mlp_dim = mlp_dim if mlp_dim is not None else 4 * llm_dim
    if mlp_type == "linear":
        w, b = _init_linear(key, llm_dim, llm_dim, dtype)
        return {"w": w, "b": b}
    elif mlp_type in ("relu", "gelu"):
        k1, k2 = jax.random.split(key)
        w1, b1 = _init_linear(k1, llm_dim, mlp_dim, dtype)
        w2, b2 = _init_linear(k2, mlp_dim, llm_dim, dtype)
        return {"w1": w1, "b1": b1, "w2": w2, "b2": b2}
    else:
        raise ValueError(f"mlp_type = {mlp_type!r} is not supported!")


# --------------------------- reference (plain JAX) ---------------------------

def mlp_block_ref(x, params, mlp_type):
    if mlp_type == "linear":
        return x @ params["w"] + params["b"][0]
    h = x @ params["w1"] + params["b1"][0]
    if mlp_type == "relu":
        h = jnp.maximum(h, 0.0)
    else:  # gelu (exact)
        h = 0.5 * h * (1.0 + lax.erf(h / jnp.sqrt(2.0)))
    return h @ params["w2"] + params["b2"][0]


# --------------------------- main --------------------------------------------

if __name__ == "__main__":
    key = jax.random.PRNGKey(0)
    B, S, llm_dim, mlp_dim = 2, 8, 32, 256

    kx, kp = jax.random.split(key)
    x = jax.random.normal(kx, (B, S, llm_dim), jnp.float32)

    ok = True
    for i, mlp_type in enumerate(["linear", "relu", "gelu"]):
        params = init_mlp_block(jax.random.fold_in(kp, i), llm_dim, mlp_dim, mlp_type)
        ref = mlp_block_ref(x, params, mlp_type)

        out = jax.block_until_ready(mlp_block_forward(x, params, mlp_type))
        if not jnp.allclose(out, ref, atol=1e-4, rtol=1e-4):
            ok = False
            print(f"MISMATCH for mlp_type={mlp_type} (fused, single H tile)")

        if mlp_type in ("relu", "gelu"):
            # Also exercise the H-tiled reduction path (gh > 1) at small scale.
            out_t = jax.block_until_ready(
                mlp_block_forward(x, params, mlp_type, th=128))
            if not jnp.allclose(out_t, ref, atol=1e-4, rtol=1e-4):
                ok = False
                print(f"MISMATCH for mlp_type={mlp_type} (tiled H)")

    if ok:
        print("KERNEL_OK")
</pallas_src>

<mosaic_0001>
module attributes {stable_mosaic.version = 11 : i64} {
  func.func @_linear_kernel(%arg0: i32, %arg1: i32, %arg2: memref<16x128xf32, #tpu.memory_space<vmem>>, %arg3: memref<128x128xf32, #tpu.memory_space<vmem>>, %arg4: memref<1x128xf32, #tpu.memory_space<vmem>>, %arg5: memref<16x128xf32, #tpu.memory_space<vmem>>) attributes {dimension_semantics = [#tpu.dimension_semantics<parallel>, #tpu.dimension_semantics<parallel>], iteration_bounds = array<i64: 1, 1>, scalar_prefetch = 0 : i64, scratch_operands = 0 : i64, tpu.core_type = #tpu.core_type<tc>, window_params = [{transform_indices = @transform_0, window_bounds = array<i64: 16, 128>}, {transform_indices = @transform_1, window_bounds = array<i64: 128, 128>}, {transform_indices = @transform_2, window_bounds = array<i64: 1, 128>}, {transform_indices = @transform_3, window_bounds = array<i64: 16, 128>}]} {
    %c0 = arith.constant 0 : index
    %c0_0 = arith.constant 0 : index
    %0 = vector.load %arg2[%c0, %c0_0] : memref<16x128xf32, #tpu.memory_space<vmem>>, vector<16x128xf32>
    %c0_1 = arith.constant 0 : index
    %c0_2 = arith.constant 0 : index
    %1 = vector.load %arg3[%c0_1, %c0_2] : memref<128x128xf32, #tpu.memory_space<vmem>>, vector<128x128xf32>
    %cst = arith.constant dense<0.000000e+00> : vector<16x128xf32>
    %2 = tpu.matmul %0, %1, %cst {dimension_numbers = #tpu.dot_dimension_numbers<[1], [0], [0], [1], [0, 0, 1, 1], [], []>} : vector<16x128xf32>, vector<128x128xf32>, vector<16x128xf32> -> vector<16x128xf32>
    %c0_3 = arith.constant 0 : index
    %c0_4 = arith.constant 0 : index
    %3 = vector.load %arg4[%c0_3, %c0_4] : memref<1x128xf32, #tpu.memory_space<vmem>>, vector<1x128xf32>
    %4 = vector.broadcast %3 : vector<1x128xf32> to vector<16x128xf32>
    %5 = arith.addf %2, %4 : vector<16x128xf32>
    %c0_5 = arith.constant 0 : index
    %c0_6 = arith.constant 0 : index
    %6 = vector.load %arg5[%c0_5, %c0_6] : memref<16x128xf32, #tpu.memory_space<vmem>>, vector<16x128xf32>
    tpu.vector_store %arg5[%c0_5, %c0_6], %5 {strides = array<i32>} : memref<16x128xf32, #tpu.memory_space<vmem>>, vector<16x128xf32>,
    return
  }
  func.func @transform_0(%arg0: i32, %arg1: i32) -> (i32, i32) {
    %c0_i32 = arith.constant 0 : i32
    %c0_i32_0 = arith.constant 0 : i32
    return %arg0, %c0_i32 : i32, i32
  }
  func.func @transform_1(%arg0: i32, %arg1: i32) -> (i32, i32) {
    %c0_i32 = arith.constant 0 : i32
    %c0_i32_0 = arith.constant 0 : i32
    return %c0_i32, %arg1 : i32, i32
  }
  func.func @transform_2(%arg0: i32, %arg1: i32) -> (i32, i32) {
    %c0_i32 = arith.constant 0 : i32
    %c0_i32_0 = arith.constant 0 : i32
    return %c0_i32, %arg1 : i32, i32
  }
  func.func @transform_3(%arg0: i32, %arg1: i32) -> (i32, i32) {
    %c0_i32 = arith.constant 0 : i32
    return %arg0, %arg1 : i32, i32
  }
}

</mosaic_0001>

<bundles_post_ra>
// kernel: tpu_custom_call.1
= control target key start
LH: loop header
LB: loop body
LE: loop exit
PB: predicated region body
PF: predicated region fallthrough
CT: control target
= control target key end

     0   :  { %8 = vsyncpa [#allocation3], 0  ;;  %s399_s0 = inlined_call_operand.hbm [shape: f32[16,128], index: 0, kind: input, shape index: {}]   ;;  %s400_s1 = inlined_call_operand.hbm [shape: f32[128,128], index: 1, kind: input, shape index: {}]   ;;  %s401_s2 = inlined_call_operand.vmem [shape: f32[1,128], index: 2, kind: input, shape index: {}]   ;;  %s402_s3 = inlined_call_operand.hbm [shape: f32[16,128], index: 3, kind: output, shape index: {}]  }
   0x1   :  { %9 = vsyncpa [#allocation6], 0 }
   0x2   :  { %10 = vsyncpa [#allocation4], 0  ;;  %s326_s12 = smov [#allocation2]   ;;  %s254_s16 = scalar_lea.hbm %s399_s0, 256 }
   0x3   :  { %s16_s13 = sshll.u32 %s326_s12, 4  ;;  %p255_p0 = scmp.ne.s32.totalorder %s399_s0, %s254_s16  ;;  %s17_s13 = int_to_ptr.vmem [resolvable:$true] %s16_s13 }
   0x4   :  { %p258_p1 = scmp.lt.u32.totalorder %s254_s16, %s399_s0 }
   0x6   :  { %p260_p2 = pnand %p258_p1, %p255_p0 }
   0x8   :  { %263 = shalt.err (!%p260_p2)
}
   0x9   :  { %s264_s21 = scalar_lea.vmem %s17_s13, 256  ;;  %p269_p4 = scmp.lt.s32.totalorder %s17_s13, %s17_s13 }
   0xa   :  { %p265_p3 = scmp.ne.s32.totalorder %s17_s13, %s264_s21  ;;  %p270_p5 = scmp.lt.s32.totalorder %s264_s21, %s264_s21 }
   0xc   :  { %p271_p6 = por %p270_p5, %p269_p4 }
   0xe   :  { %p272_p7 = pnand %p271_p6, %p265_p3 }
  0x10   :  { %275 = shalt.err (!%p272_p7)
}
  0x11   :  { %s327_s22 = smov 128   ;;  %s328_s23 = smov 8  }
  0x12   :  { %22 = dma.hbm_to_vmem [thread:$0]  %s399_s0, 256, %s17_s13, [#allocation3], %s327_s22, %s327_s22, %s328_s23  }
  0x13   :  { %s329_s26 = smov [#allocation5]   ;;  %s276_s30 = scalar_lea.hbm %s400_s1, 2048 }
  0x14   :  { %s28_s27 = sshll.u32 %s329_s26, 4  ;;  %p277_p8 = scmp.ne.s32.totalorder %s400_s1, %s276_s30  ;;  %s29_s27 = int_to_ptr.vmem [resolvable:$true] %s28_s27 }
  0x15   :  { %p280_p9 = scmp.lt.u32.totalorder %s276_s30, %s400_s1 }
  0x17   :  { %p282_p10 = pnand %p280_p9, %p277_p8 }
  0x19   :  { %285 = shalt.err (!%p282_p10)
}
  0x1a   :  { %s286_s8 = scalar_lea.vmem %s29_s27, 2048  ;;  %p291_p12 = scmp.lt.s32.totalorder %s29_s27, %s29_s27 }
  0x1b   :  { %p287_p11 = scmp.ne.s32.totalorder %s29_s27, %s286_s8  ;;  %p292_p13 = scmp.lt.s32.totalorder %s286_s8, %s286_s8 }
  0x1d   :  { %p293_p0 = por %p292_p13, %p291_p12 }
  0x1f   :  { %p294_p1 = pnand %p293_p0, %p287_p11 }
  0x21   :  { %297 = shalt.err (!%p294_p1)
}
  0x22   :  { %34 = dma.hbm_to_vmem [thread:$0]  %s400_s1, 2048, %s29_s27, [#allocation6], %s327_s22, %s327_s22, %s328_s23  }
  0x23   :  { %320 = dma.done.wait [#allocation3], 256  }
  0x24   :  { %321 = vsyncadd [#allocation3], 4294967040 }
  0x25   :  { %322 = dma.done.wait [#allocation6], 2048  }
  0x26   :  { %323 = vsyncadd [#allocation6], 4294965248  ;;  %v45_v0 = vld [vmem:[#allocation5] sm:$0xff]  ;;  %v46_v1 = vld [vmem:[#allocation5 + $0x8] sm:$0xff]  ;;  %s330_s11 = smov [#allocation7]  }
  0x27   :  { %v47_v2 = vld [vmem:[#allocation5 + $0x10] sm:$0xff]  ;;  %v217_v3 = vpack.c.bf16 %v46_v1, %v45_v0  ;;  %v48_v4 = vld [vmem:[#allocation5 + $0x18] sm:$0xff]  ;;  %v49_v6 = vld [vmem:[#allocation5 + $0x20] sm:$0xff]  ;;  %s150_s12 = sshll.u32 %s330_s11, 4  ;;  %s151_s12 = int_to_ptr.vmem [resolvable:$true] %s150_s12 }
  0x28   :  { %v221_v5 = vpack.c.bf16 %v48_v4, %v47_v2  ;;  %v50_v7 = vld [vmem:[#allocation5 + $0x28] sm:$0xff]  ;;  %v43_v9 = vld [vmem:[#allocation2] sm:$0xff]  ;;  %v52_v11 = vld [vmem:[#allocation5 + $0x38] sm:$0xff]  ;;  %s298_s13 = scalar_lea.vmem %s151_s12, 256  ;;  %p303_p3 = scmp.lt.s32.totalorder %s151_s12, %s151_s12 }
  0x29   :  { %218 = vmatprep.subr.bf16.mxu0 %v217_v3  ;;  %v225_v8 = vpack.c.bf16 %v50_v7, %v49_v6  ;;  %v51_v10 = vld [vmem:[#allocation5 + $0x30] sm:$0xff]  ;;  %214 = vmatprep.mubr.f32.mxu0 %v43_v9  ;;  %v53_v13 = vld [vmem:[#allocation5 + $0x40] sm:$0xff]  ;;  %v54_v14 = vld [vmem:[#allocation5 + $0x48] sm:$0xff]  ;;  %p299_p2 = scmp.ne.s32.totalorder %s151_s12, %s298_s13  ;;  %p304_p4 = scmp.lt.s32.totalorder %s298_s13, %s298_s13 }
  0x2a   :  { %220 = vmatpush3.bf16.msra.mxu0 %v217_v3  ;;  %v229_v12 = vpack.c.bf16 %v52_v11, %v51_v10  ;;  %v233_v15 = vpack.c.bf16 %v54_v14, %v53_v13  ;;  %v55_v16 = vld [vmem:[#allocation5 + $0x50] sm:$0xff]  ;;  %v56_v17 = vld [vmem:[#allocation5 + $0x58] sm:$0xff]  ;;  %v57_v19 = vld [vmem:[#allocation5 + $0x60] sm:$0xff] }
  0x2b   :  { %222 = vmatprep.subr.bf16.mxu0 %v221_v5  ;;  %v237_v18 = vpack.c.bf16 %v56_v17, %v55_v16  ;;  %v58_v20 = vld [vmem:[#allocation5 + $0x68] sm:$0xff]  ;;  %v59_v22 = vld [vmem:[#allocation5 + $0x70] sm:$0xff]  ;;  %v60_v23 = vld [vmem:[#allocation5 + $0x78] sm:$0xff]  ;;  %p305_p5 = por %p304_p4, %p303_p3 }
  0x2c   :  { %v241_v21 = vpack.c.bf16 %v58_v20, %v57_v19  ;;  %v245_v24 = vpack.c.bf16 %v60_v23, %v59_v22  ;;  %v44_v25 = vld [vmem:[#allocation2 + $0x8] sm:$0xff]  ;;  %v163_v26 = vld [vmem:[%s401_s2] ss:$0 sm:$0xff] }
  0x2d   :  { %p306_p6 = pnand %p305_p5, %p299_p2 }
  0x2e   :  { %224 = vmatpush3.bf16.msra.mxu0 %v221_v5 }
  0x2f   :  { %226 = vmatprep.subr.bf16.mxu0 %v225_v8 }
  0x32   :  { %228 = vmatpush3.bf16.msra.mxu0 %v225_v8 }
  0x33   :  { %230 = vmatprep.subr.bf16.mxu0 %v229_v12 }
  0x36   :  { %232 = vmatpush3.bf16.msra.mxu0 %v229_v12 }
  0x37   :  { %234 = vmatprep.subr.bf16.mxu0 %v233_v15 }
  0x3a   :  { %236 = vmatpush3.bf16.msra.mxu0 %v233_v15 }
  0x3b   :  { %238 = vmatprep.subr.bf16.mxu0 %v237_v18 }
  0x3e   :  { %240 = vmatpush3.bf16.msra.mxu0 %v237_v18 }
  0x3f   :  { %242 = vmatprep.subr.bf16.mxu0 %v241_v21 }
  0x42   :  { %244 = vmatpush3.bf16.msra.mxu0 %v241_v21 }
  0x43   :  { %246 = vmatprep.subr.bf16.mxu0 %v245_v24 }
  0x46   :  { %248 = vmatpush3.bf16.msra.mxu0 %v245_v24 }
  0x49   :  { %215 = vmatmul.mubr.f32.vlgmr.msra.gmra.mrb[0].mxu0 %v44_v25 }
 0x11c   :  { %v216_v27 = vpop.f32.mrb[0].mxu0 }
 0x11d   :  { %v140_v28 = vadd.f32 %v216_v27, %v163_v26  ;;  %v134_v29 = vpop.f32.mrb[1].mxu0 }
 0x11e   :  { %v135_v30 = vadd.f32 %v163_v26, %v134_v29 }
 0x11f   :  { %144 = vst [vmem:[#allocation7 + $0x8] sm:$0xff] %v140_v28 }
 0x120   :  { %143 = vst [vmem:[#allocation7] sm:$0xff] %v135_v30 }
 0x121   :  { %309 = shalt.err (!%p306_p6)
}
 0x122   :  { %s310_s2 = scalar_lea.hbm %s402_s3, 256 }
 0x123   :  { %p311_p7 = scmp.ne.s32.totalorder %s402_s3, %s310_s2  ;;  %p314_p8 = scmp.lt.u32.totalorder %s310_s2, %s402_s3 }
 0x125   :  { %p316_p9 = pnand %p314_p8, %p311_p7 }
 0x127   :  { %319 = shalt.err (!%p316_p9)
}
 0x128   :  { %156 = dma.vmem_to_hbm [thread:$0]  %s151_s12, 256, %s402_s3, [#allocation4], %s327_s22, %s327_s22, %s328_s23  }
 0x129   :  { %324 = dma.done.wait [#allocation4], 256  }
 0x12a   :  { %325 = vsyncadd [#allocation4], 4294967040 }
 0x12b   :  { %160 = vsyncpa [#allocation3], 1 }
 0x12c   :  { %161 = vsyncpa [#allocation6], 1 }
 0x12d   :  { %162 = vsyncpa [#allocation4], 1 }

</bundles_post_ra>
